<compile_context>
chip_gen: v7x
topology: tpu7x:2x2x1
jax: 0.10.0
libtpu: 0.0.40
codegen_flags: <defaults>
</compile_context>

<pallas_src>
import functools

import jax
import jax.numpy as jnp
from jax.experimental import pallas as pl
from jax.experimental.pallas import tpu as pltpu

EPS = 1e-5
_LANE = 128
_SUBLANE = 8
_W_CAP = 512                             # max packed row width (lanes)
_TARGET_BLOCK_BYTES = 2 * 1024 * 1024    # ~2 MiB per pipelined buffer
_FUSED_BYTES_LIMIT = 2 * 1024 * 1024     # single-pass path when padded x fits here
_VMEM_LIMIT = 32 * 1024 * 1024


def _round_up(a, m):
    return ((a + m - 1) // m) * m


def _choose_packing(n_rows, c):
    """Pick k so that (N, C) reshapes *for free* to (N//k, k*C) (k | N) while
    maximizing lane density of W = k*C (then preferring wider rows)."""
    best_k = 1
    best = (c / _round_up(c, _LANE), c)
    kmax = max(1, _W_CAP // c)
    for k in range(2, kmax + 1):
        if n_rows % k:
            continue
        w = k * c
        score = (w / _round_up(w, _LANE), w)
        if score > best:
            best, best_k = score, k
    return best_k


# ---------------------------------------------------------------------------
# Single-pass kernel (small N): whole packed array resident in VMEM.
#   x_ref:     (np_rows, W) packed input (W = k*C)
#   gamma_ref: (1, C), beta_ref: (1, C)
#   o_ref:     (np_rows, W)
# ---------------------------------------------------------------------------
def _fused_bn_kernel(x_ref, gamma_ref, beta_ref, o_ref, *, k, C, n_total):
    x = x_ref[...].astype(jnp.float32)                      # (rows, W)
    sums_w = jnp.sum(x, axis=0, keepdims=True)              # (1, W) per-lane sums
    sqs_w = jnp.sum(x * x, axis=0, keepdims=True)           # (1, W)

    # Fold the k lane-groups down to per-channel (static lane slices).
    sums_c = sums_w[:, 0:C]
    sqs_c = sqs_w[:, 0:C]
    for g in range(1, k):
        sums_c = sums_c + sums_w[:, g * C:(g + 1) * C]
        sqs_c = sqs_c + sqs_w[:, g * C:(g + 1) * C]

    inv_n = jnp.float32(1.0 / n_total)
    mean = sums_c * inv_n
    var = jnp.maximum(sqs_c * inv_n - mean * mean, 0.0)     # biased, clamped >= 0
    inv = jax.lax.rsqrt(var + jnp.float32(EPS))
    scale_c = gamma_ref[...] * inv                          # (1, C)
    shift_c = beta_ref[...] - mean * scale_c                # (1, C)

    if k > 1:
        scale_w = jnp.concatenate([scale_c] * k, axis=1)    # (1, W)
        shift_w = jnp.concatenate([shift_c] * k, axis=1)
    else:
        scale_w, shift_w = scale_c, shift_c

    o_ref[...] = (x * scale_w + shift_w).astype(o_ref.dtype)


# ---------------------------------------------------------------------------
# Two-pass path, kernel 1: per-lane sum / sum-of-squares partials.
#   x_ref:   (rt, W) tile of the packed input (last block may be partial)
#   sum_ref: (8, W) resident accumulator (one per grid "split")
#   sq_ref:  (8, W) resident accumulator
# Accumulation streams 8-row slices through a fori_loop carry (few live vregs);
# the ragged tail and any overhang blocks (uneven megacore split) are masked
# with the *unclamped* global row offset.
# ---------------------------------------------------------------------------
def _stats_kernel(x_ref, sum_ref, sq_ref, *, rt, np_rows, steps):
    s = pl.program_id(0)
    i = pl.program_id(1)

    @pl.when(i == 0)
    def _():
        sum_ref[...] = jnp.zeros_like(sum_ref)
        sq_ref[...] = jnp.zeros_like(sq_ref)

    W = x_ref.shape[-1]
    nslices = rt // _SUBLANE
    start = (s * steps + i) * rt          # unclamped logical row offset
    nvalid = np_rows - start              # rows of real data in this block

    zeros = jnp.zeros((_SUBLANE, W), jnp.float32)
    row_iota = jax.lax.broadcasted_iota(jnp.int32, (_SUBLANE, W), 0)

    def full_body(j, carry):
        acc_s, acc_q = carry
        r0 = pl.multiple_of(j * _SUBLANE, _SUBLANE)
        xb = x_ref[pl.ds(r0, _SUBLANE), :].astype(jnp.float32)
        return acc_s + xb, acc_q + xb * xb

    def masked_body(j, carry):
        acc_s, acc_q = carry
        r0 = pl.multiple_of(j * _SUBLANE, _SUBLANE)
        xb = x_ref[pl.ds(r0, _SUBLANE), :].astype(jnp.float32)
        xb = jnp.where(row_iota + j * _SUBLANE < nvalid, xb, 0.0)
        return acc_s + xb, acc_q + xb * xb

    @pl.when(nvalid >= rt)                # interior block: no masking overhead
    def _():
        acc_s, acc_q = jax.lax.fori_loop(
            0, nslices, full_body, (zeros, zeros), unroll=8)
        sum_ref[...] += acc_s
        sq_ref[...] += acc_q

    @pl.when(nvalid < rt)                 # tail / overhang block: mask garbage rows
    def _():
        acc_s, acc_q = jax.lax.fori_loop(
            0, nslices, masked_body, (zeros, zeros), unroll=8)
        sum_ref[...] += acc_s
        sq_ref[...] += acc_q


# ---------------------------------------------------------------------------
# Two-pass path, kernel 2: y = x * scale + shift, tiled over packed rows.
# Partial last block: out-of-range rows are computed on stale data but their
# writeback is dropped by Pallas, so no padding / slicing is needed.
# ---------------------------------------------------------------------------
def _normalize_kernel(x_ref, scale_ref, shift_ref, o_ref):
    x = x_ref[...].astype(jnp.float32)
    o_ref[...] = (x * scale_ref[...] + shift_ref[...]).astype(o_ref.dtype)


@functools.partial(jax.jit, static_argnames=("row_tile", "fused_bytes_limit"))
def bn_forward(x, gamma, beta, *, row_tile=None, fused_bytes_limit=_FUSED_BYTES_LIMIT):
    """Training-mode BatchNorm over the last axis of x (B, D1, D2, C)."""
    B, D1, D2, C = x.shape
    N = B * D1 * D2
    itemsize = jnp.dtype(x.dtype).itemsize

    # Lane packing (free reshape, k divides N by construction).
    k = _choose_packing(N, C)
    W = k * C
    Wp = _round_up(W, _LANE)
    np_rows = N // k

    xp = x.reshape(np_rows, W)            # row-major reshape: no data movement

    gamma_f = gamma.astype(jnp.float32).reshape(1, C)
    beta_f = beta.astype(jnp.float32).reshape(1, C)

    padded_bytes = _round_up(np_rows, _SUBLANE) * Wp * itemsize

    # --- small-N fast path: one kernel, 1 read + 1 write of HBM ------------
    if padded_bytes <= fused_bytes_limit:
        yp = pl.pallas_call(
            functools.partial(_fused_bn_kernel, k=k, C=C, n_total=N),
            out_shape=jax.ShapeDtypeStruct((np_rows, W), x.dtype),
            grid=(1,),
            in_specs=[
                pl.BlockSpec((np_rows, W), lambda i: (0, 0)),
                pl.BlockSpec((1, C), lambda i: (0, 0)),
                pl.BlockSpec((1, C), lambda i: (0, 0)),
            ],
            out_specs=pl.BlockSpec((np_rows, W), lambda i: (0, 0)),
            compiler_params=pltpu.CompilerParams(
                dimension_semantics=("arbitrary",),
                vmem_limit_bytes=_VMEM_LIMIT,
            ),
        )(xp, gamma_f, beta_f)
        return yp.reshape(B, D1, D2, C)

    # --- tile size: ~2 MiB per pipelined buffer (lane-padded width) --------
    if row_tile is None:
        rt = (_TARGET_BLOCK_BYTES // (Wp * itemsize)) // _SUBLANE * _SUBLANE
    else:
        rt = _round_up(int(row_tile), _SUBLANE)
    rt = max(_SUBLANE, min(rt, _round_up(np_rows, _SUBLANE)))

    total_blocks = pl.cdiv(np_rows, rt)
    nsplit = 2 if total_blocks >= 2 else 1       # both v7x cores whenever possible
    steps = pl.cdiv(total_blocks, nsplit)

    # --- pass 1: per-lane sum / sumsq partials ------------------------------
    sum_part, sq_part = pl.pallas_call(
        functools.partial(_stats_kernel, rt=rt, np_rows=np_rows, steps=steps),
        out_shape=(
            jax.ShapeDtypeStruct((nsplit * _SUBLANE, W), jnp.float32),
            jax.ShapeDtypeStruct((nsplit * _SUBLANE, W), jnp.float32),
        ),
        grid=(nsplit, steps),
        in_specs=[
            # clamp the block index so overhang iterations of an uneven split
            # still issue an in-bounds DMA (their data is masked in-kernel).
            pl.BlockSpec(
                (rt, W),
                lambda s, i: (jnp.minimum(s * steps + i, total_blocks - 1), 0),
            ),
        ],
        out_specs=(
            pl.BlockSpec((_SUBLANE, W), lambda s, i: (s, 0)),
            pl.BlockSpec((_SUBLANE, W), lambda s, i: (s, 0)),
        ),
        compiler_params=pltpu.CompilerParams(
            dimension_semantics=("parallel", "arbitrary"),
            vmem_limit_bytes=_VMEM_LIMIT,
        ),
    )(xp)

    # Scalar glue: fold partials to per-channel, build scale/shift (tiny HLOs).
    sums_c = sum_part.sum(axis=0).reshape(k, C).sum(axis=0)   # (C,)
    sqs_c = sq_part.sum(axis=0).reshape(k, C).sum(axis=0)     # (C,)
    inv_n = jnp.float32(1.0 / N)
    mean = sums_c * inv_n
    var = jnp.maximum(sqs_c * inv_n - mean * mean, 0.0)       # biased, clamped
    inv = jax.lax.rsqrt(var + jnp.float32(EPS))
    scale_c = gamma.astype(jnp.float32) * inv
    shift_c = beta.astype(jnp.float32) - mean * scale_c
    scale_w = jnp.tile(scale_c, (k,)).reshape(1, W)
    shift_w = jnp.tile(shift_c, (k,)).reshape(1, W)

    # --- pass 2: y = x * scale + shift --------------------------------------
    yp = pl.pallas_call(
        _normalize_kernel,
        out_shape=jax.ShapeDtypeStruct((np_rows, W), x.dtype),
        grid=(total_blocks,),
        in_specs=[
            pl.BlockSpec((rt, W), lambda i: (i, 0)),
            pl.BlockSpec((1, W), lambda i: (0, 0)),
            pl.BlockSpec((1, W), lambda i: (0, 0)),
        ],
        out_specs=pl.BlockSpec((rt, W), lambda i: (i, 0)),
        compiler_params=pltpu.CompilerParams(
            dimension_semantics=("parallel",),
            vmem_limit_bytes=_VMEM_LIMIT,
        ),
    )(xp, scale_w, shift_w)

    return yp.reshape(B, D1, D2, C)


def bn_reference(x, gamma, beta):
    """Pure-JAX reference of the PyTorch BN module's forward (training mode)."""
    xf = x.astype(jnp.float32)
    mean = jnp.mean(xf, axis=(0, 1, 2), keepdims=True)
    var = jnp.mean((xf - mean) ** 2, axis=(0, 1, 2), keepdims=True)  # biased
    y = (xf - mean) * jax.lax.rsqrt(var + EPS)
    return (y * gamma.reshape(1, 1, 1, -1) + beta.reshape(1, 1, 1, -1)).astype(x.dtype)


if __name__ == "__main__":
    def run_case(shape, seed, **kw):
        B, D1, D2, C = shape
        key = jax.random.fold_in(jax.random.PRNGKey(0), seed)
        x = jax.random.normal(key, shape, dtype=jnp.float32) + 0.3
        gamma = 1.0 + 0.1 * jnp.arange(C, dtype=jnp.float32)
        beta = 0.01 * jnp.arange(C, dtype=jnp.float32)
        y = jax.block_until_ready(bn_forward(x, gamma, beta, **kw))
        y_ref = bn_reference(x, gamma, beta)
        assert y.shape == x.shape
        assert jnp.allclose(y, y_ref, atol=1e-4, rtol=1e-4), f"mismatch for {shape} {kw}"

    # fused single-pass path (whole packed array VMEM-resident)
    run_case((2, 8, 8, 16), seed=0)   # k=32 -> W=512, fully lane-dense
    run_case((3, 5, 7, 16), seed=1)   # ragged N=105 -> k=15, W=240 (no pad / no slice)
    run_case((2, 4, 8, 48), seed=2)   # C=48 -> k=8, W=384 (generalized packing)

    # two-pass path forced (fused_bytes_limit=0): multi-block stats with an
    # uneven megacore split (overhang block) and a partial tail block.
    run_case((4, 9, 8, 32), seed=3, row_tile=8, fused_bytes_limit=0)
    run_case((3, 5, 7, 16), seed=4, row_tile=8, fused_bytes_limit=0)

    print("KERNEL_OK")
</pallas_src>

<mosaic_0001>
module attributes {stable_mosaic.version = 11 : i64} {
  func.func @_fused_bn_kernel(%arg0: i32, %arg1: memref<4x512xf32, #tpu.memory_space<vmem>>, %arg2: memref<1x16xf32, #tpu.memory_space<vmem>>, %arg3: memref<1x16xf32, #tpu.memory_space<vmem>>, %arg4: memref<4x512xf32, #tpu.memory_space<vmem>>) attributes {dimension_semantics = [#tpu.dimension_semantics<arbitrary>], iteration_bounds = array<i64: 1>, scalar_prefetch = 0 : i64, scratch_operands = 0 : i64, tpu.core_type = #tpu.core_type<tc>, window_params = [{pipeline_mode = #tpu.pipeline_mode<synchronous>, transform_indices = @transform_0, window_bounds = array<i64: 4, 512>}, {pipeline_mode = #tpu.pipeline_mode<synchronous>, transform_indices = @transform_1, window_bounds = array<i64: 1, 16>}, {pipeline_mode = #tpu.pipeline_mode<synchronous>, transform_indices = @transform_2, window_bounds = array<i64: 1, 16>}, {pipeline_mode = #tpu.pipeline_mode<synchronous>, transform_indices = @transform_3, window_bounds = array<i64: 4, 512>}]} {
    %c0 = arith.constant 0 : index
    %c0_0 = arith.constant 0 : index
    %0 = vector.load %arg1[%c0, %c0_0] : memref<4x512xf32, #tpu.memory_space<vmem>>, vector<4x512xf32>
    %cst = arith.constant dense<0.000000e+00> : vector<512xf32>
    %1 = vector.multi_reduction <add>, %0, %cst [0] : vector<4x512xf32> to vector<512xf32>
    %2 = vector.shape_cast %1 : vector<512xf32> to vector<1x512xf32>
    %3 = arith.mulf %0, %0 : vector<4x512xf32>
    %cst_1 = arith.constant dense<0.000000e+00> : vector<512xf32>
    %4 = vector.multi_reduction <add>, %3, %cst_1 [0] : vector<4x512xf32> to vector<512xf32>
    %5 = vector.shape_cast %4 : vector<512xf32> to vector<1x512xf32>
    %6 = vector.extract_strided_slice %2 {offsets = [0, 0], sizes = [1, 16], strides = [1, 1]} : vector<1x512xf32> to vector<1x16xf32>
    %7 = vector.extract_strided_slice %5 {offsets = [0, 0], sizes = [1, 16], strides = [1, 1]} : vector<1x512xf32> to vector<1x16xf32>
    %8 = vector.extract_strided_slice %2 {offsets = [0, 16], sizes = [1, 16], strides = [1, 1]} : vector<1x512xf32> to vector<1x16xf32>
    %9 = arith.addf %6, %8 : vector<1x16xf32>
    %10 = vector.extract_strided_slice %5 {offsets = [0, 16], sizes = [1, 16], strides = [1, 1]} : vector<1x512xf32> to vector<1x16xf32>
    %11 = arith.addf %7, %10 : vector<1x16xf32>
    %12 = vector.extract_strided_slice %2 {offsets = [0, 32], sizes = [1, 16], strides = [1, 1]} : vector<1x512xf32> to vector<1x16xf32>
    %13 = arith.addf %9, %12 : vector<1x16xf32>
    %14 = vector.extract_strided_slice %5 {offsets = [0, 32], sizes = [1, 16], strides = [1, 1]} : vector<1x512xf32> to vector<1x16xf32>
    %15 = arith.addf %11, %14 : vector<1x16xf32>
    %16 = vector.extract_strided_slice %2 {offsets = [0, 48], sizes = [1, 16], strides = [1, 1]} : vector<1x512xf32> to vector<1x16xf32>
    %17 = arith.addf %13, %16 : vector<1x16xf32>
    %18 = vector.extract_strided_slice %5 {offsets = [0, 48], sizes = [1, 16], strides = [1, 1]} : vector<1x512xf32> to vector<1x16xf32>
    %19 = arith.addf %15, %18 : vector<1x16xf32>
    %20 = vector.extract_strided_slice %2 {offsets = [0, 64], sizes = [1, 16], strides = [1, 1]} : vector<1x512xf32> to vector<1x16xf32>
    %21 = arith.addf %17, %20 : vector<1x16xf32>
    %22 = vector.extract_strided_slice %5 {offsets = [0, 64], sizes = [1, 16], strides = [1, 1]} : vector<1x512xf32> to vector<1x16xf32>
    %23 = arith.addf %19, %22 : vector<1x16xf32>
    %24 = vector.extract_strided_slice %2 {offsets = [0, 80], sizes = [1, 16], strides = [1, 1]} : vector<1x512xf32> to vector<1x16xf32>
    %25 = arith.addf %21, %24 : vector<1x16xf32>
    %26 = vector.extract_strided_slice %5 {offsets = [0, 80], sizes = [1, 16], strides = [1, 1]} : vector<1x512xf32> to vector<1x16xf32>
    %27 = arith.addf %23, %26 : vector<1x16xf32>
    %28 = vector.extract_strided_slice %2 {offsets = [0, 96], sizes = [1, 16], strides = [1, 1]} : vector<1x512xf32> to vector<1x16xf32>
    %29 = arith.addf %25, %28 : vector<1x16xf32>
    %30 = vector.extract_strided_slice %5 {offsets = [0, 96], sizes = [1, 16], strides = [1, 1]} : vector<1x512xf32> to vector<1x16xf32>
    %31 = arith.addf %27, %30 : vector<1x16xf32>
    %32 = vector.extract_strided_slice %2 {offsets = [0, 112], sizes = [1, 16], strides = [1, 1]} : vector<1x512xf32> to vector<1x16xf32>
    %33 = arith.addf %29, %32 : vector<1x16xf32>
    %34 = vector.extract_strided_slice %5 {offsets = [0, 112], sizes = [1, 16], strides = [1, 1]} : vector<1x512xf32> to vector<1x16xf32>
    %35 = arith.addf %31, %34 : vector<1x16xf32>
    %36 = vector.extract_strided_slice %2 {offsets = [0, 128], sizes = [1, 16], strides = [1, 1]} : vector<1x512xf32> to vector<1x16xf32>
    %37 = arith.addf %33, %36 : vector<1x16xf32>
    %38 = vector.extract_strided_slice %5 {offsets = [0, 128], sizes = [1, 16], strides = [1, 1]} : vector<1x512xf32> to vector<1x16xf32>
    %39 = arith.addf %35, %38 : vector<1x16xf32>
    %40 = vector.extract_strided_slice %2 {offsets = [0, 144], sizes = [1, 16], strides = [1, 1]} : vector<1x512xf32> to vector<1x16xf32>
    %41 = arith.addf %37, %40 : vector<1x16xf32>
    %42 = vector.extract_strided_slice %5 {offsets = [0, 144], sizes = [1, 16], strides = [1, 1]} : vector<1x512xf32> to vector<1x16xf32>
    %43 = arith.addf %39, %42 : vector<1x16xf32>
    %44 = vector.extract_strided_slice %2 {offsets = [0, 160], sizes = [1, 16], strides = [1, 1]} : vector<1x512xf32> to vector<1x16xf32>
    %45 = arith.addf %41, %44 : vector<1x16xf32>
    %46 = vector.extract_strided_slice %5 {offsets = [0, 160], sizes = [1, 16], strides = [1, 1]} : vector<1x512xf32> to vector<1x16xf32>
    %47 = arith.addf %43, %46 : vector<1x16xf32>
    %48 = vector.extract_strided_slice %2 {offsets = [0, 176], sizes = [1, 16], strides = [1, 1]} : vector<1x512xf32> to vector<1x16xf32>
    %49 = arith.addf %45, %48 : vector<1x16xf32>
    %50 = vector.extract_strided_slice %5 {offsets = [0, 176], sizes = [1, 16], strides = [1, 1]} : vector<1x512xf32> to vector<1x16xf32>
    %51 = arith.addf %47, %50 : vector<1x16xf32>
    %52 = vector.extract_strided_slice %2 {offsets = [0, 192], sizes = [1, 16], strides = [1, 1]} : vector<1x512xf32> to vector<1x16xf32>
    %53 = arith.addf %49, %52 : vector<1x16xf32>
    %54 = vector.extract_strided_slice %5 {offsets = [0, 192], sizes = [1, 16], strides = [1, 1]} : vector<1x512xf32> to vector<1x16xf32>
    %55 = arith.addf %51, %54 : vector<1x16xf32>
    %56 = vector.extract_strided_slice %2 {offsets = [0, 208], sizes = [1, 16], strides = [1, 1]} : vector<1x512xf32> to vector<1x16xf32>
    %57 = arith.addf %53, %56 : vector<1x16xf32>
    %58 = vector.extract_strided_slice %5 {offsets = [0, 208], sizes = [1, 16], strides = [1, 1]} : vector<1x512xf32> to vector<1x16xf32>
    %59 = arith.addf %55, %58 : vector<1x16xf32>
    %60 = vector.extract_strided_slice %2 {offsets = [0, 224], sizes = [1, 16], strides = [1, 1]} : vector<1x512xf32> to vector<1x16xf32>
    %61 = arith.addf %57, %60 : vector<1x16xf32>
    %62 = vector.extract_strided_slice %5 {offsets = [0, 224], sizes = [1, 16], strides = [1, 1]} : vector<1x512xf32> to vector<1x16xf32>
    %63 = arith.addf %59, %62 : vector<1x16xf32>
    %64 = vector.extract_strided_slice %2 {offsets = [0, 240], sizes = [1, 16], strides = [1, 1]} : vector<1x512xf32> to vector<1x16xf32>
    %65 = arith.addf %61, %64 : vector<1x16xf32>
    %66 = vector.extract_strided_slice %5 {offsets = [0, 240], sizes = [1, 16], strides = [1, 1]} : vector<1x512xf32> to vector<1x16xf32>
    %67 = arith.addf %63, %66 : vector<1x16xf32>
    %68 = vector.extract_strided_slice %2 {offsets = [0, 256], sizes = [1, 16], strides = [1, 1]} : vector<1x512xf32> to vector<1x16xf32>
    %69 = arith.addf %65, %68 : vector<1x16xf32>
    %70 = vector.extract_strided_slice %5 {offsets = [0, 256], sizes = [1, 16], strides = [1, 1]} : vector<1x512xf32> to vector<1x16xf32>
    %71 = arith.addf %67, %70 : vector<1x16xf32>
    %72 = vector.extract_strided_slice %2 {offsets = [0, 272], sizes = [1, 16], strides = [1, 1]} : vector<1x512xf32> to vector<1x16xf32>
    %73 = arith.addf %69, %72 : vector<1x16xf32>
    %74 = vector.extract_strided_slice %5 {offsets = [0, 272], sizes = [1, 16], strides = [1, 1]} : vector<1x512xf32> to vector<1x16xf32>
    %75 = arith.addf %71, %74 : vector<1x16xf32>
    %76 = vector.extract_strided_slice %2 {offsets = [0, 288], sizes = [1, 16], strides = [1, 1]} : vector<1x512xf32> to vector<1x16xf32>
    %77 = arith.addf %73, %76 : vector<1x16xf32>
    %78 = vector.extract_strided_slice %5 {offsets = [0, 288], sizes = [1, 16], strides = [1, 1]} : vector<1x512xf32> to vector<1x16xf32>
    %79 = arith.addf %75, %78 : vector<1x16xf32>
    %80 = vector.extract_strided_slice %2 {offsets = [0, 304], sizes = [1, 16], strides = [1, 1]} : vector<1x512xf32> to vector<1x16xf32>
    %81 = arith.addf %77, %80 : vector<1x16xf32>
    %82 = vector.extract_strided_slice %5 {offsets = [0, 304], sizes = [1, 16], strides = [1, 1]} : vector<1x512xf32> to vector<1x16xf32>
    %83 = arith.addf %79, %82 : vector<1x16xf32>
    %84 = vector.extract_strided_slice %2 {offsets = [0, 320], sizes = [1, 16], strides = [1, 1]} : vector<1x512xf32> to vector<1x16xf32>
    %85 = arith.addf %81, %84 : vector<1x16xf32>
    %86 = vector.extract_strided_slice %5 {offsets = [0, 320], sizes = [1, 16], strides = [1, 1]} : vector<1x512xf32> to vector<1x16xf32>
    %87 = arith.addf %83, %86 : vector<1x16xf32>
    %88 = vector.extract_strided_slice %2 {offsets = [0, 336], sizes = [1, 16], strides = [1, 1]} : vector<1x512xf32> to vector<1x16xf32>
    %89 = arith.addf %85, %88 : vector<1x16xf32>
    %90 = vector.extract_strided_slice %5 {offsets = [0, 336], sizes = [1, 16], strides = [1, 1]} : vector<1x512xf32> to vector<1x16xf32>
    %91 = arith.addf %87, %90 : vector<1x16xf32>
    %92 = vector.extract_strided_slice %2 {offsets = [0, 352], sizes = [1, 16], strides = [1, 1]} : vector<1x512xf32> to vector<1x16xf32>
    %93 = arith.addf %89, %92 : vector<1x16xf32>
    %94 = vector.extract_strided_slice %5 {offsets = [0, 352], sizes = [1, 16], strides = [1, 1]} : vector<1x512xf32> to vector<1x16xf32>
    %95 = arith.addf %91, %94 : vector<1x16xf32>
    %96 = vector.extract_strided_slice %2 {offsets = [0, 368], sizes = [1, 16], strides = [1, 1]} : vector<1x512xf32> to vector<1x16xf32>
    %97 = arith.addf %93, %96 : vector<1x16xf32>
    %98 = vector.extract_strided_slice %5 {offsets = [0, 368], sizes = [1, 16], strides = [1, 1]} : vector<1x512xf32> to vector<1x16xf32>
    %99 = arith.addf %95, %98 : vector<1x16xf32>
    %100 = vector.extract_strided_slice %2 {offsets = [0, 384], sizes = [1, 16], strides = [1, 1]} : vector<1x512xf32> to vector<1x16xf32>
    %101 = arith.addf %97, %100 : vector<1x16xf32>
    %102 = vector.extract_strided_slice %5 {offsets = [0, 384], sizes = [1, 16], strides = [1, 1]} : vector<1x512xf32> to vector<1x16xf32>
    %103 = arith.addf %99, %102 : vector<1x16xf32>
    %104 = vector.extract_strided_slice %2 {offsets = [0, 400], sizes = [1, 16], strides = [1, 1]} : vector<1x512xf32> to vector<1x16xf32>
    %105 = arith.addf %101, %104 : vector<1x16xf32>
    %106 = vector.extract_strided_slice %5 {offsets = [0, 400], sizes = [1, 16], strides = [1, 1]} : vector<1x512xf32> to vector<1x16xf32>
    %107 = arith.addf %103, %106 : vector<1x16xf32>
    %108 = vector.extract_strided_slice %2 {offsets = [0, 416], sizes = [1, 16], strides = [1, 1]} : vector<1x512xf32> to vector<1x16xf32>
    %109 = arith.addf %105, %108 : vector<1x16xf32>
    %110 = vector.extract_strided_slice %5 {offsets = [0, 416], sizes = [1, 16], strides = [1, 1]} : vector<1x512xf32> to vector<1x16xf32>
    %111 = arith.addf %107, %110 : vector<1x16xf32>
    %112 = vector.extract_strided_slice %2 {offsets = [0, 432], sizes = [1, 16], strides = [1, 1]} : vector<1x512xf32> to vector<1x16xf32>
    %113 = arith.addf %109, %112 : vector<1x16xf32>
    %114 = vector.extract_strided_slice %5 {offsets = [0, 432], sizes = [1, 16], strides = [1, 1]} : vector<1x512xf32> to vector<1x16xf32>
    %115 = arith.addf %111, %114 : vector<1x16xf32>
    %116 = vector.extract_strided_slice %2 {offsets = [0, 448], sizes = [1, 16], strides = [1, 1]} : vector<1x512xf32> to vector<1x16xf32>
    %117 = arith.addf %113, %116 : vector<1x16xf32>
    %118 = vector.extract_strided_slice %5 {offsets = [0, 448], sizes = [1, 16], strides = [1, 1]} : vector<1x512xf32> to vector<1x16xf32>
    %119 = arith.addf %115, %118 : vector<1x16xf32>
    %120 = vector.extract_strided_slice %2 {offsets = [0, 464], sizes = [1, 16], strides = [1, 1]} : vector<1x512xf32> to vector<1x16xf32>
    %121 = arith.addf %117, %120 : vector<1x16xf32>
    %122 = vector.extract_strided_slice %5 {offsets = [0, 464], sizes = [1, 16], strides = [1, 1]} : vector<1x512xf32> to vector<1x16xf32>
    %123 = arith.addf %119, %122 : vector<1x16xf32>
    %124 = vector.extract_strided_slice %2 {offsets = [0, 480], sizes = [1, 16], strides = [1, 1]} : vector<1x512xf32> to vector<1x16xf32>
    %125 = arith.addf %121, %124 : vector<1x16xf32>
    %126 = vector.extract_strided_slice %5 {offsets = [0, 480], sizes = [1, 16], strides = [1, 1]} : vector<1x512xf32> to vector<1x16xf32>
    %127 = arith.addf %123, %126 : vector<1x16xf32>
    %128 = vector.extract_strided_slice %2 {offsets = [0, 496], sizes = [1, 16], strides = [1, 1]} : vector<1x512xf32> to vector<1x16xf32>
    %129 = arith.addf %125, %128 : vector<1x16xf32>
    %130 = vector.extract_strided_slice %5 {offsets = [0, 496], sizes = [1, 16], strides = [1, 1]} : vector<1x512xf32> to vector<1x16xf32>
    %131 = arith.addf %127, %130 : vector<1x16xf32>
    %cst_2 = arith.constant 7.812500e-03 : f32
    %132 = vector.broadcast %cst_2 : f32 to vector<1x16xf32>
    %133 = arith.mulf %129, %132 : vector<1x16xf32>
    %cst_3 = arith.constant 7.812500e-03 : f32
    %134 = vector.broadcast %cst_3 : f32 to vector<1x16xf32>
    %135 = arith.mulf %131, %134 : vector<1x16xf32>
    %136 = arith.mulf %133, %133 : vector<1x16xf32>
    %137 = arith.subf %135, %136 : vector<1x16xf32>
    %cst_4 = arith.constant 0.000000e+00 : f32
    %138 = vector.broadcast %cst_4 : f32 to vector<1x16xf32>
    %139 = arith.maximumf %137, %138 : vector<1x16xf32>
    %cst_5 = arith.constant 9.99999974E-6 : f32
    %140 = vector.broadcast %cst_5 : f32 to vector<1x16xf32>
    %141 = arith.addf %139, %140 : vector<1x16xf32>
    %142 = math.rsqrt %141 : vector<1x16xf32>
    %c0_6 = arith.constant 0 : index
    %c0_7 = arith.constant 0 : index
    %143 = vector.load %arg2[%c0_6, %c0_7] : memref<1x16xf32, #tpu.memory_space<vmem>>, vector<1x16xf32>
    %144 = arith.mulf %143, %142 : vector<1x16xf32>
    %c0_8 = arith.constant 0 : index
    %c0_9 = arith.constant 0 : index
    %145 = vector.load %arg3[%c0_8, %c0_9] : memref<1x16xf32, #tpu.memory_space<vmem>>, vector<1x16xf32>
    %146 = arith.mulf %133, %144 : vector<1x16xf32>
    %147 = arith.subf %145, %146 : vector<1x16xf32>
    %148 = tpu.concatenate %144, %144, %144, %144, %144, %144, %144, %144, %144, %144, %144, %144, %144, %144, %144, %144 in 1 : vector<1x16xf32>, vector<1x16xf32>, vector<1x16xf32>, vector<1x16xf32>, vector<1x16xf32>, vector<1x16xf32>, vector<1x16xf32>, vector<1x16xf32>, vector<1x16xf32>, vector<1x16xf32>, vector<1x16xf32>, vector<1x16xf32>, vector<1x16xf32>, vector<1x16xf32>, vector<1x16xf32>, vector<1x16xf32> -> vector<1x256xf32>
    %149 = tpu.concatenate %144, %144, %144, %144, %144, %144, %144, %144, %144, %144, %144, %144, %144, %144, %144, %144 in 1 : vector<1x16xf32>, vector<1x16xf32>, vector<1x16xf32>, vector<1x16xf32>, vector<1x16xf32>, vector<1x16xf32>, vector<1x16xf32>, vector<1x16xf32>, vector<1x16xf32>, vector<1x16xf32>, vector<1x16xf32>, vector<1x16xf32>, vector<1x16xf32>, vector<1x16xf32>, vector<1x16xf32>, vector<1x16xf32> -> vector<1x256xf32>
    %150 = tpu.concatenate %148, %149 in 1 : vector<1x256xf32>, vector<1x256xf32> -> vector<1x512xf32>
    %151 = tpu.concatenate %147, %147, %147, %147, %147, %147, %147, %147, %147, %147, %147, %147, %147, %147, %147, %147 in 1 : vector<1x16xf32>, vector<1x16xf32>, vector<1x16xf32>, vector<1x16xf32>, vector<1x16xf32>, vector<1x16xf32>, vector<1x16xf32>, vector<1x16xf32>, vector<1x16xf32>, vector<1x16xf32>, vector<1x16xf32>, vector<1x16xf32>, vector<1x16xf32>, vector<1x16xf32>, vector<1x16xf32>, vector<1x16xf32> -> vector<1x256xf32>
    %152 = tpu.concatenate %147, %147, %147, %147, %147, %147, %147, %147, %147, %147, %147, %147, %147, %147, %147, %147 in 1 : vector<1x16xf32>, vector<1x16xf32>, vector<1x16xf32>, vector<1x16xf32>, vector<1x16xf32>, vector<1x16xf32>, vector<1x16xf32>, vector<1x16xf32>, vector<1x16xf32>, vector<1x16xf32>, vector<1x16xf32>, vector<1x16xf32>, vector<1x16xf32>, vector<1x16xf32>, vector<1x16xf32>, vector<1x16xf32> -> vector<1x256xf32>
    %153 = tpu.concatenate %151, %152 in 1 : vector<1x256xf32>, vector<1x256xf32> -> vector<1x512xf32>
    %154 = vector.broadcast %150 : vector<1x512xf32> to vector<4x512xf32>
    %155 = arith.mulf %0, %154 : vector<4x512xf32>
    %156 = vector.broadcast %153 : vector<1x512xf32> to vector<4x512xf32>
    %157 = arith.addf %155, %156 : vector<4x512xf32>
    %c0_10 = arith.constant 0 : index
    %c0_11 = arith.constant 0 : index
    %158 = vector.load %arg4[%c0_10, %c0_11] : memref<4x512xf32, #tpu.memory_space<vmem>>, vector<4x512xf32>
    tpu.vector_store %arg4[%c0_10, %c0_11], %157 {strides = array<i32>} : memref<4x512xf32, #tpu.memory_space<vmem>>, vector<4x512xf32>,
    return
  }
  func.func @transform_0(%arg0: i32) -> (i32, i32) {
    %c0_i32 = arith.constant 0 : i32
    %c0_i32_0 = arith.constant 0 : i32
    %c0_i32_1 = arith.constant 0 : i32
    return %c0_i32, %c0_i32_0 : i32, i32
  }
  func.func @transform_1(%arg0: i32) -> (i32, i32) {
    %c0_i32 = arith.constant 0 : i32
    %c0_i32_0 = arith.constant 0 : i32
    %c0_i32_1 = arith.constant 0 : i32
    return %c0_i32, %c0_i32_0 : i32, i32
  }
  func.func @transform_2(%arg0: i32) -> (i32, i32) {
    %c0_i32 = arith.constant 0 : i32
    %c0_i32_0 = arith.constant 0 : i32
    %c0_i32_1 = arith.constant 0 : i32
    return %c0_i32, %c0_i32_0 : i32, i32
  }
  func.func @transform_3(%arg0: i32) -> (i32, i32) {
    %c0_i32 = arith.constant 0 : i32
    %c0_i32_0 = arith.constant 0 : i32
    %c0_i32_1 = arith.constant 0 : i32
    return %c0_i32, %c0_i32_0 : i32, i32
  }
}

</mosaic_0001>

<bundles_post_ra>
// kernel: bn_forward.1
= control target key start
LH: loop header
LB: loop body
LE: loop exit
PB: predicated region body
PF: predicated region fallthrough
CT: control target
= control target key end

     0   :  { %vm22_vm0 = vcmask 1043456   ;;  %s445_s14 = smov 96   ;;  %s446_s15 = smov 112   ;;  %vm363_vm1 = vcmask 130048   ;;  %vm365_vm2 = vcmask 261120   ;;  %vm367_vm3 = vcmask 392192   ;;  %s678_s0 = inlined_call_operand.vmem [shape: f32[4,512], index: 0, kind: input, shape index: {}]   ;;  %s679_s1 = inlined_call_operand.vmem [shape: f32[1,16], index: 1, kind: input, shape index: {}]   ;;  %s680_s2 = inlined_call_operand.vmem [shape: f32[1,16], index: 2, kind: input, shape index: {}]   ;;  %s681_s3 = inlined_call_operand.vmem [shape: f32[4,512], index: 3, kind: output, shape index: {}]  }
   0x1   :  { %v475_v0 = vld [vmem:[%s678_s0] sm:$0xff]  ;;  %s447_s16 = smov 80   ;;  %s448_s17 = smov 64   ;;  %v517_v30 = vld [vmem:[%s678_s0 + $0x8] sm:$0xff]  ;;  %vm369_vm4 = vcmask 523264   ;;  %vm371_vm5 = vcmask 654336  }
   0x2   :  { %v23_v1 = vsel %vm22_vm0, %v475_v0, 0.0  ;;  %v51_v2 = vmul.f32 %v475_v0, %v475_v0  ;;  %v18_v14 = vcombine.high %v475_v0, %v475_v0  ;;  %s449_s18 = smov 48   ;;  %s450_s19 = smov 32   ;;  %v52_v33 = vmul.f32 %v517_v30, %v517_v30 }
   0x3   :  { %v24_v3 = vrot.slane %v23_v1, 4  ;;  %s451_s22 = smov 16   ;;  %v37_v35 = vsel %vm22_vm0, %v517_v30, 0.0  ;;  %v19_v49 = vcombine.high %v517_v30, %v517_v30  ;;  %vm373_vm6 = vcmask 785408  }
   0x4   :  { %v59_v4 = vsel %vm22_vm0, %v51_v2, 0.0  ;;  %v55_v13 = vcombine.high %v51_v2, %v51_v2  ;;  %v30_v19 = vsel %vm22_vm0, %v18_v14, 0.0  ;;  %v73_v34 = vsel %vm22_vm0, %v52_v33, 0.0 }
   0x5   :  { %v25_v5 = vadd.f32 %v24_v3, %v23_v1  ;;  %v60_v6 = vrot.slane %v59_v4, 4  ;;  %v31_v21 = vrot.slane %v30_v19, 4  ;;  %v74_v36 = vrot.slane %v73_v34, 4 }
   0x6   :  { %v66_v18 = vsel %vm22_vm0, %v55_v13, 0.0  ;;  %v38_v37 = vrot.slane %v37_v35, 4  ;;  %v56_v48 = vcombine.high %v52_v33, %v52_v33  ;;  %v44_v51 = vsel %vm22_vm0, %v19_v49, 0.0 }
   0x7   :  { %v26_v7 = vrot.slane %v25_v5, 2  ;;  %v61_v8 = vadd.f32 %v60_v6, %v59_v4  ;;  %v67_v20 = vrot.slane %v66_v18, 4  ;;  %v32_v23 = vadd.f32 %v31_v21, %v30_v19 }
   0x8   :  { %v75_v38 = vadd.f32 %v74_v36, %v73_v34  ;;  %v39_v39 = vadd.f32 %v38_v37, %v37_v35  ;;  %v80_v50 = vsel %vm22_vm0, %v56_v48, 0.0  ;;  %v45_v53 = vrot.slane %v44_v51, 4 }
   0x9   :  { %v27_v9 = vadd.f32 %v26_v7, %v25_v5  ;;  %v62_v10 = vrot.slane %v61_v8, 2  ;;  %v68_v22 = vadd.f32 %v67_v20, %v66_v18  ;;  %v33_v25 = vrot.slane %v32_v23, 2 }
   0xa   :  { %v76_v40 = vrot.slane %v75_v38, 2  ;;  %v40_v41 = vrot.slane %v39_v39, 2  ;;  %v81_v52 = vrot.slane %v80_v50, 4  ;;  %v46_v55 = vadd.f32 %v45_v53, %v44_v51 }
   0xb   :  { %v28_v11 = vrot.slane %v27_v9, 1  ;;  %v63_v12 = vadd.f32 %v62_v10, %v61_v8  ;;  %v69_v24 = vrot.slane %v68_v22, 2  ;;  %v34_v27 = vadd.f32 %v33_v25, %v32_v23 }
   0xc   :  { %v77_v42 = vadd.f32 %v76_v40, %v75_v38  ;;  %v41_v43 = vadd.f32 %v40_v41, %v39_v39  ;;  %v82_v54 = vadd.f32 %v81_v52, %v80_v50  ;;  %v47_v57 = vrot.slane %v46_v55, 2 }
   0xd   :  { %v484_v15 = vadd.f32 %v28_v11, %v27_v9  ;;  %v64_v16 = vrot.slane %v63_v12, 1  ;;  %v70_v26 = vadd.f32 %v69_v24, %v68_v22  ;;  %v35_v29 = vrot.slane %v34_v27, 1 }
   0xe   :  { %v78_v44 = vrot.slane %v77_v42, 1  ;;  %v42_v45 = vrot.slane %v41_v43, 1  ;;  %v83_v56 = vrot.slane %v82_v54, 2  ;;  %v48_v59 = vadd.f32 %v47_v57, %v46_v55 }
   0xf   :  { %97 = vrot.lane.b32.xlu1 %v484_v15, %s445_s14  ;;  %88 = vrot.lane.b32.xlu0 %v484_v15, %s446_s15  ;;  %v490_v17 = vadd.f32 %v64_v16, %v63_v12  ;;  %v71_v28 = vrot.slane %v70_v26, 1  ;;  %v525_v32 = vadd.f32 %v35_v29, %v34_v27  ;;  %vm375_vm7 = vcmask 916480  }
  0x10   :  { %v560_v46 = vadd.f32 %v78_v44, %v77_v42  ;;  %v562_v47 = vadd.f32 %v42_v45, %v41_v43  ;;  %v84_v58 = vadd.f32 %v83_v56, %v82_v54  ;;  %v49_v61 = vrot.slane %v48_v59, 1 }
  0x11   :  { %v523_v31 = vadd.f32 %v71_v28, %v70_v26 }
  0x12   :  { %v85_v60 = vrot.slane %v84_v58, 1  ;;  %v598_v63 = vadd.f32 %v49_v61, %v48_v59 }
  0x13   :  { %101 = vrot.lane.b32.xlu1 %v490_v17, %s445_s14  ;;  %105 = vrot.lane.b32.xlu0 %v484_v15, %s447_s16 }
  0x14   :  { %v596_v62 = vadd.f32 %v85_v60, %v84_v58 }
  0x17   :  { %109 = vrot.lane.b32.xlu1 %v490_v17, %s447_s16  ;;  %113 = vrot.lane.b32.xlu0 %v484_v15, %s448_s17 }
  0x1b   :  { %117 = vrot.lane.b32.xlu1 %v490_v17, %s448_s17  ;;  %121 = vrot.lane.b32.xlu0 %v484_v15, %s449_s18 }
  0x1f   :  { %125 = vrot.lane.b32.xlu1 %v490_v17, %s449_s18  ;;  %93 = vrot.lane.b32.xlu0 %v490_v17, %s446_s15 }
  0x23   :  { %133 = vrot.lane.b32.xlu1 %v490_v17, %s450_s19  ;;  %129 = vrot.lane.b32.xlu0 %v484_v15, %s450_s19 }
  0x27   :  { %141 = vrot.lane.b32.xlu1 %v490_v17, %s451_s22  ;;  %137 = vrot.lane.b32.xlu0 %v484_v15, %s451_s22 }
  0x2b   :  { %153 = vrot.lane.b32.xlu1 %v523_v31, %s446_s15  ;;  %148 = vrot.lane.b32.xlu0 %v525_v32, %s446_s15 }
  0x2f   :  { %161 = vrot.lane.b32.xlu1 %v523_v31, %s445_s14  ;;  %157 = vrot.lane.b32.xlu0 %v525_v32, %s445_s14 }
  0x33   :  { %169 = vrot.lane.b32.xlu1 %v523_v31, %s447_s16  ;;  %165 = vrot.lane.b32.xlu0 %v525_v32, %s447_s16 }
  0x37   :  { %177 = vrot.lane.b32.xlu1 %v523_v31, %s448_s17  ;;  %173 = vrot.lane.b32.xlu0 %v525_v32, %s448_s17 }
  0x3b   :  { %185 = vrot.lane.b32.xlu1 %v523_v31, %s449_s18  ;;  %181 = vrot.lane.b32.xlu0 %v525_v32, %s449_s18 }
  0x3f   :  { %193 = vrot.lane.b32.xlu1 %v523_v31, %s450_s19  ;;  %189 = vrot.lane.b32.xlu0 %v525_v32, %s450_s19 }
  0x43   :  { %201 = vrot.lane.b32.xlu1 %v523_v31, %s451_s22  ;;  %197 = vrot.lane.b32.xlu0 %v525_v32, %s451_s22 }
  0x47   :  { %213 = vrot.lane.b32.xlu1 %v560_v46, %s446_s15  ;;  %208 = vrot.lane.b32.xlu0 %v562_v47, %s446_s15 }
  0x4b   :  { %221 = vrot.lane.b32.xlu1 %v560_v46, %s445_s14  ;;  %217 = vrot.lane.b32.xlu0 %v562_v47, %s445_s14 }
  0x4f   :  { %229 = vrot.lane.b32.xlu1 %v560_v46, %s447_s16  ;;  %225 = vrot.lane.b32.xlu0 %v562_v47, %s447_s16 }
  0x53   :  { %237 = vrot.lane.b32.xlu1 %v560_v46, %s448_s17  ;;  %233 = vrot.lane.b32.xlu0 %v562_v47, %s448_s17 }
  0x57   :  { %245 = vrot.lane.b32.xlu1 %v560_v46, %s449_s18  ;;  %241 = vrot.lane.b32.xlu0 %v562_v47, %s449_s18 }
  0x5b   :  { %253 = vrot.lane.b32.xlu1 %v560_v46, %s450_s19  ;;  %249 = vrot.lane.b32.xlu0 %v562_v47, %s450_s19 }
  0x5f   :  { %261 = vrot.lane.b32.xlu1 %v560_v46, %s451_s22  ;;  %257 = vrot.lane.b32.xlu0 %v562_v47, %s451_s22 }
  0x63   :  { %273 = vrot.lane.b32.xlu1 %v596_v62, %s446_s15  ;;  %268 = vrot.lane.b32.xlu0 %v598_v63, %s446_s15 }
  0x67   :  { %281 = vrot.lane.b32.xlu1 %v596_v62, %s445_s14  ;;  %277 = vrot.lane.b32.xlu0 %v598_v63, %s445_s14 }
  0x6b   :  { %289 = vrot.lane.b32.xlu1 %v596_v62, %s447_s16  ;;  %285 = vrot.lane.b32.xlu0 %v598_v63, %s447_s16 }
  0x6f   :  { %297 = vrot.lane.b32.xlu1 %v596_v62, %s448_s17  ;;  %293 = vrot.lane.b32.xlu0 %v598_v63, %s448_s17 }
  0x73   :  { %305 = vrot.lane.b32.xlu1 %v596_v62, %s449_s18  ;;  %301 = vrot.lane.b32.xlu0 %v598_v63, %s449_s18 }
  0x77   :  { %313 = vrot.lane.b32.xlu1 %v596_v62, %s450_s19  ;;  %309 = vrot.lane.b32.xlu0 %v598_v63, %s450_s19 }
  0x7b   :  { %321 = vrot.lane.b32.xlu1 %v596_v62, %s451_s22  ;;  %317 = vrot.lane.b32.xlu0 %v598_v63, %s451_s22 }
  0x81   :  { %v98_v1 = vpop.permute.xlu1 %97  ;;  %v89_v2 = vpop.permute.xlu0 %88 }
  0x82   :  { %v91_v24 = vadd.f32 %v89_v2, %v484_v15 }
  0x84   :  { %v100_v28 = vadd.f32 %v98_v1, %v91_v24 }
  0x85   :  { %v102_v3 = vpop.permute.xlu1 %101  ;;  %v106_v4 = vpop.permute.xlu0 %105 }
  0x86   :  { %v108_v35 = vadd.f32 %v106_v4, %v100_v28 }
  0x89   :  { %v110_v5 = vpop.permute.xlu1 %109  ;;  %v114_v6 = vpop.permute.xlu0 %113 }
  0x8d   :  { %v118_v7 = vpop.permute.xlu1 %117  ;;  %v122_v8 = vpop.permute.xlu0 %121 }
  0x91   :  { %v126_v9 = vpop.permute.xlu1 %125  ;;  %v94_v10 = vpop.permute.xlu0 %93 }
  0x92   :  { %v96_v13 = vadd.f32 %v94_v10, %v490_v17  ;;  %v116_v17 = vadd.f32 %v114_v6, %v108_v35 }
  0x94   :  { %v104_v18 = vadd.f32 %v102_v3, %v96_v13  ;;  %v124_v39 = vadd.f32 %v122_v8, %v116_v17 }
  0x95   :  { %v134_v11 = vpop.permute.xlu1 %133  ;;  %v130_v12 = vpop.permute.xlu0 %129 }
  0x96   :  { %v112_v21 = vadd.f32 %v110_v5, %v104_v18  ;;  %v132_v41 = vadd.f32 %v130_v12, %v124_v39 }
  0x98   :  { %v120_v25 = vadd.f32 %v118_v7, %v112_v21 }
  0x99   :  { %v142_v14 = vpop.permute.xlu1 %141  ;;  %v138_v16 = vpop.permute.xlu0 %137 }
  0x9a   :  { %v128_v29 = vadd.f32 %v126_v9, %v120_v25  ;;  %v140_v44 = vadd.f32 %v138_v16, %v132_v41 }
  0x9c   :  { %v136_v36 = vadd.f32 %v134_v11, %v128_v29  ;;  %v145_v50 = vadd.f32 %v140_v44, %v525_v32 }
  0x9d   :  { %v154_v19 = vpop.permute.xlu1 %153  ;;  %v149_v20 = vpop.permute.xlu0 %148 }
  0x9e   :  { %v144_v40 = vadd.f32 %v142_v14, %v136_v36  ;;  %v151_v53 = vadd.f32 %v149_v20, %v145_v50 }
  0xa0   :  { %v146_v15 = vadd.f32 %v144_v40, %v523_v31 }
  0xa1   :  { %v162_v22 = vpop.permute.xlu1 %161  ;;  %v158_v23 = vpop.permute.xlu0 %157 }
  0xa2   :  { %v156_v49 = vadd.f32 %v154_v19, %v146_v15  ;;  %v160_v55 = vadd.f32 %v158_v23, %v151_v53 }
  0xa4   :  { %v164_v54 = vadd.f32 %v162_v22, %v156_v49 }
  0xa5   :  { %v170_v26 = vpop.permute.xlu1 %169  ;;  %v166_v27 = vpop.permute.xlu0 %165 }
  0xa6   :  { %v172_v58 = vadd.f32 %v170_v26, %v164_v54  ;;  %v168_v59 = vadd.f32 %v166_v27, %v160_v55 }
  0xa9   :  { %v178_v33 = vpop.permute.xlu1 %177  ;;  %v174_v34 = vpop.permute.xlu0 %173 }
  0xaa   :  { %v180_v60 = vadd.f32 %v178_v33, %v172_v58  ;;  %v176_v61 = vadd.f32 %v174_v34, %v168_v59 }
  0xad   :  { %v186_v37 = vpop.permute.xlu1 %185  ;;  %v182_v38 = vpop.permute.xlu0 %181 }
  0xae   :  { %v188_v3 = vadd.f32 %v186_v37, %v180_v60  ;;  %v184_v31 = vadd.f32 %v182_v38, %v176_v61 }
  0xb1   :  { %v194_v42 = vpop.permute.xlu1 %193  ;;  %v190_v43 = vpop.permute.xlu0 %189 }
  0xb2   :  { %v196_v4 = vadd.f32 %v194_v42, %v188_v3  ;;  %v192_v5 = vadd.f32 %v190_v43, %v184_v31 }
  0xb5   :  { %v202_v45 = vpop.permute.xlu1 %201  ;;  %v198_v48 = vpop.permute.xlu0 %197 }
  0xb6   :  { %v204_v32 = vadd.f32 %v202_v45, %v196_v4  ;;  %v200_v8 = vadd.f32 %v198_v48, %v192_v5 }
  0xb8   :  { %v206_v11 = vadd.f32 %v204_v32, %v560_v46  ;;  %v205_v12 = vadd.f32 %v200_v8, %v562_v47  ;;  %v332_v32 = vld [vmem:[%s679_s1] sm:$0x1] }
  0xb9   :  { %v214_v51 = vpop.permute.xlu1 %213  ;;  %v209_v52 = vpop.permute.xlu0 %208 }
  0xba   :  { %v216_v16 = vadd.f32 %v214_v51, %v206_v11  ;;  %v211_v18 = vadd.f32 %v209_v52, %v205_v12  ;;  %v334_v11 = vld [vmem:[%s680_s2] sm:$0x1] }
  0xbd   :  { %v222_v56 = vpop.permute.xlu1 %221  ;;  %v218_v57 = vpop.permute.xlu0 %217 }
  0xbe   :  { %v224_v19 = vadd.f32 %v222_v56, %v216_v16  ;;  %v220_v20 = vadd.f32 %v218_v57, %v211_v18 }
  0xc1   :  { %v230_v1 = vpop.permute.xlu1 %229  ;;  %v226_v2 = vpop.permute.xlu0 %225 }
  0xc2   :  { %v232_v23 = vadd.f32 %v230_v1, %v224_v19  ;;  %v228_v24 = vadd.f32 %v226_v2, %v220_v20 }
  0xc5   :  { %v238_v6 = vpop.permute.xlu1 %237  ;;  %v234_v7 = vpop.permute.xlu0 %233 }
  0xc6   :  { %v240_v25 = vadd.f32 %v238_v6, %v232_v23  ;;  %v236_v26 = vadd.f32 %v234_v7, %v228_v24  ;;  %v338_v6 = vlaneseq }
  0xc8   :  { %v339_v7 = vshrl.u32 %v338_v6, 7 }
  0xc9   :  { %v246_v9 = vpop.permute.xlu1 %245  ;;  %v242_v10 = vpop.permute.xlu0 %241 }
  0xca   :  { %v248_v29 = vadd.f32 %v246_v9, %v240_v25  ;;  %v244_v33 = vadd.f32 %v242_v10, %v236_v26  ;;  %v340_v8 = vsub.s32 0, %v339_v7 }
  0xcd   :  { %v254_v13 = vpop.permute.xlu1 %253  ;;  %v250_v14 = vpop.permute.xlu0 %249 }
  0xce   :  { %v256_v34 = vadd.f32 %v254_v13, %v248_v29  ;;  %v252_v46 = vadd.f32 %v250_v14, %v244_v33 }
  0xd1   :  { %v262_v21 = vpop.permute.xlu1 %261  ;;  %v258_v22 = vpop.permute.xlu0 %257 }
  0xd2   :  { %v264_v36 = vadd.f32 %v262_v21, %v256_v34  ;;  %v260_v17 = vadd.f32 %v258_v22, %v252_v46 }
  0xd4   :  { %v266_v39 = vadd.f32 %v264_v36, %v596_v62  ;;  %v265_v40 = vadd.f32 %v260_v17, %v598_v63 }
  0xd5   :  { %v274_v27 = vpop.permute.xlu1 %273  ;;  %v269_v28 = vpop.permute.xlu0 %268 }
  0xd6   :  { %v276_v43 = vadd.f32 %v274_v27, %v266_v39  ;;  %v271_v44 = vadd.f32 %v269_v28, %v265_v40 }
  0xd9   :  { %v282_v35 = vpop.permute.xlu1 %281  ;;  %v278_v47 = vpop.permute.xlu0 %277 }
  0xda   :  { %v284_v15 = vadd.f32 %v282_v35, %v276_v43  ;;  %v280_v45 = vadd.f32 %v278_v47, %v271_v44 }
  0xdd   :  { %v290_v37 = vpop.permute.xlu1 %289  ;;  %v286_v38 = vpop.permute.xlu0 %285 }
  0xde   :  { %v292_v50 = vadd.f32 %v290_v37, %v284_v15  ;;  %v288_v51 = vadd.f32 %v286_v38, %v280_v45 }
  0xe1   :  { %v298_v41 = vpop.permute.xlu1 %297  ;;  %v294_v42 = vpop.permute.xlu0 %293 }
  0xe2   :  { %v300_v52 = vadd.f32 %v298_v41, %v292_v50  ;;  %v296_v53 = vadd.f32 %v294_v42, %v288_v51 }
  0xe5   :  { %v306_v48 = vpop.permute.xlu1 %305  ;;  %v302_v49 = vpop.permute.xlu0 %301 }
  0xe6   :  { %v308_v56 = vadd.f32 %v306_v48, %v300_v52  ;;  %v304_v57 = vadd.f32 %v302_v49, %v296_v53 }
  0xe9   :  { %v314_v54 = vpop.permute.xlu1 %313  ;;  %v310_v55 = vpop.permute.xlu0 %309 }
  0xea   :  { %v316_v58 = vadd.f32 %v314_v54, %v308_v56  ;;  %v312_v62 = vadd.f32 %v310_v55, %v304_v57 }
  0xed   :  { %v322_v59 = vpop.permute.xlu1 %321  ;;  %v318_v63 = vpop.permute.xlu0 %317 }
  0xee   :  { %v324_v60 = vadd.f32 %v322_v59, %v316_v58  ;;  %v320_v61 = vadd.f32 %v318_v63, %v312_v62 }
  0xf0   :  { %v325_v1 = vmul.f32 0.0078125, %v320_v61  ;;  %v326_v2 = vmul.f32 0.0078125, %v324_v60 }
  0xf2   :  { %v327_v3 = vmul.f32 %v325_v1, %v325_v1 }
  0xf4   :  { %v328_v31 = vsub.f32 %v326_v2, %v327_v3 }
  0xf6   :  { %v329_v4 = vmax.f32 %v328_v31, 0.0 }
  0xf8   :  { %v330_v5 = vadd.f32 1e-05, %v329_v4 }
  0xfa   :  { %443 = vrsqrt.f32 %v330_v5 }
 0x104   :  { %v444_v9 = vpop.eup %443 }
 0x105   :  { %v333_v10 = vmul.f32 %v444_v9, %v332_v32 }
 0x107   :  { %v335_v12 = vmul.f32 %v333_v10, %v325_v1  ;;  %v341_v13 = vrot.slane %v333_v10, %v340_v8 }
 0x109   :  { %v336_v14 = vsub.f32 %v334_v11, %v335_v12  ;;  %345 = vrot.lane.b32.xlu1 %v341_v13, %s450_s19  ;;  %342 = vrot.lane.b32.xlu0 %v341_v13, %s451_s22 }
 0x10b   :  { %v381_v16 = vrot.slane %v336_v14, %v340_v8 }
 0x10d   :  { %348 = vrot.lane.b32.xlu0 %v341_v13, %s449_s18  ;;  %382 = vrot.lane.b32.xlu1 %v381_v16, %s451_s22 }
 0x111   :  { %351 = vrot.lane.b32.xlu0 %v341_v13, %s448_s17  ;;  %385 = vrot.lane.b32.xlu1 %v381_v16, %s450_s19 }
 0x115   :  { %354 = vrot.lane.b32.xlu0 %v341_v13, %s447_s16  ;;  %388 = vrot.lane.b32.xlu1 %v381_v16, %s449_s18 }
 0x119   :  { %357 = vrot.lane.b32.xlu0 %v341_v13, %s445_s14  ;;  %391 = vrot.lane.b32.xlu1 %v381_v16, %s448_s17 }
 0x11d   :  { %360 = vrot.lane.b32.xlu0 %v341_v13, %s446_s15  ;;  %394 = vrot.lane.b32.xlu1 %v381_v16, %s447_s16 }
 0x121   :  { %397 = vrot.lane.b32.xlu0 %v381_v16, %s445_s14  ;;  %400 = vrot.lane.b32.xlu1 %v381_v16, %s446_s15 }
 0x17b   :  { %v346_v18 = vpop.permute.xlu1 %345  ;;  %v343_v19 = vpop.permute.xlu0 %342 }
 0x17c   :  { %v364_v26 = vsel %vm363_vm1, %v333_v10, %v343_v19 }
 0x17d   :  { %v366_v27 = vsel %vm365_vm2, %v364_v26, %v346_v18 }
 0x17f   :  { %v349_v20 = vpop.permute.xlu0 %348  ;;  %v383_v21 = vpop.permute.xlu1 %382 }
 0x180   :  { %v368_v33 = vsel %vm367_vm3, %v366_v27, %v349_v20  ;;  %v403_v35 = vsel %vm363_vm1, %v336_v14, %v383_v21 }
 0x183   :  { %v352_v22 = vpop.permute.xlu0 %351  ;;  %v386_v23 = vpop.permute.xlu1 %385 }
 0x184   :  { %v370_v34 = vsel %vm369_vm4, %v368_v33, %v352_v22  ;;  %v404_v37 = vsel %vm365_vm2, %v403_v35, %v386_v23 }
 0x187   :  { %v355_v24 = vpop.permute.xlu0 %354  ;;  %v389_v25 = vpop.permute.xlu1 %388 }
 0x188   :  { %v372_v46 = vsel %vm371_vm5, %v370_v34, %v355_v24  ;;  %v405_v39 = vsel %vm367_vm3, %v404_v37, %v389_v25 }
 0x18b   :  { %v358_v28 = vpop.permute.xlu0 %357  ;;  %v392_v29 = vpop.permute.xlu1 %391 }
 0x18c   :  { %v374_v47 = vsel %vm373_vm6, %v372_v46, %v358_v28  ;;  %v406_v41 = vsel %vm369_vm4, %v405_v39, %v392_v29 }
 0x18f   :  { %v361_v36 = vpop.permute.xlu0 %360  ;;  %v395_v17 = vpop.permute.xlu1 %394 }
 0x190   :  { %v376_v38 = vsel %vm375_vm7, %v374_v47, %v361_v36  ;;  %v407_v42 = vsel %vm371_vm5, %v406_v41, %v395_v17 }
 0x191   :  { %v413_v40 = vrot.slane %v376_v38, %v340_v8 }
 0x193   :  { %v398_v43 = vpop.permute.xlu0 %397  ;;  %v401_v44 = vpop.permute.xlu1 %400  ;;  %v415_v15 = vcombine.low %v413_v40, %v413_v40 }
 0x194   :  { %v408_v45 = vsel %vm373_vm6, %v407_v42, %v398_v43 }
 0x195   :  { %v409_v48 = vsel %vm375_vm7, %v408_v45, %v401_v44  ;;  %v417_v50 = vmul.f32 %v415_v15, %v475_v0  ;;  %v418_v51 = vmul.f32 %v415_v15, %v517_v30 }
 0x196   :  { %v422_v49 = vrot.slane %v409_v48, %v340_v8 }
 0x198   :  { %v424_v52 = vcombine.low %v422_v49, %v422_v49 }
 0x19a   :  { %v426_v53 = vadd.f32 %v424_v52, %v417_v50  ;;  %v427_v54 = vadd.f32 %v424_v52, %v418_v51 }
 0x19c   :  { %428 = vst [vmem:[%s681_s3] sm:$0xff] %v426_v53  ;;  %429 = vst [vmem:[%s681_s3 + $0x8] sm:$0xff] %v427_v54 }

</bundles_post_ra>
